<compile_context>
chip_gen: v5e
topology: v5e:2x2
jax: 0.10.0
libtpu: 0.0.40
codegen_flags: <defaults>
</compile_context>

<pallas_src>
import functools

import jax
import jax.numpy as jnp
import numpy as np
from jax.experimental import pallas as pl
from jax.experimental.pallas import tpu as pltpu


# ----------------------------------------------------------------------------
# Tiled matmul (QKV / R projections)
# ----------------------------------------------------------------------------
def _matmul_tiled_kernel(x_ref, w_ref, o_ref, acc_ref):
    @pl.when(pl.program_id(2) == 0)
    def _():
        acc_ref[...] = jnp.zeros_like(acc_ref)

    acc_ref[...] += jnp.dot(x_ref[...], w_ref[...],
                            preferred_element_type=jnp.float32)

    @pl.when(pl.program_id(2) == pl.num_programs(2) - 1)
    def _():
        o_ref[...] = acc_ref[...].astype(o_ref.dtype)


def _pick_tile(dim, target):
    """Largest divisor of `dim` that is <= target (keeps grids exact)."""
    t = min(dim, target)
    while dim % t:
        t -= 1
    return t


def pallas_matmul(x, w, tm=256, tn=256, tk=512):
    m, k = x.shape
    k2, n = w.shape
    assert k == k2
    tm = _pick_tile(m, tm)
    tn = _pick_tile(n, tn)
    tk = _pick_tile(k, tk)
    return pl.pallas_call(
        _matmul_tiled_kernel,
        out_shape=jax.ShapeDtypeStruct((m, n), jnp.float32),
        grid=(m // tm, n // tn, k // tk),
        in_specs=[pl.BlockSpec((tm, tk), lambda i, j, kk: (i, kk)),
                  pl.BlockSpec((tk, tn), lambda i, j, kk: (kk, j))],
        out_specs=pl.BlockSpec((tm, tn), lambda i, j, kk: (i, j)),
        scratch_shapes=[pltpu.VMEM((tm, tn), jnp.float32)],
        compiler_params=pltpu.CompilerParams(
            dimension_semantics=("parallel", "parallel", "arbitrary")),
    )(x, w)


# ----------------------------------------------------------------------------
# BD = (q + r_r_bias) * scale @ r_k^T   (per batch, all heads) — needed as an
# HBM array only because the exact pad/reshape relative shift is kept as a
# JAX-level reindex between the two attention kernels.
# ----------------------------------------------------------------------------
def _bd_kernel(n_head, d_head, scale, qkv_ref, rk_ref, rrb_ref, bd_ref):
    nd = n_head * d_head
    qkv = qkv_ref[0]                         # (qlen, 3*n*d)
    rk = rk_ref[...]                         # (rlen, n*d)
    dn = (((1,), (1,)), ((), ()))            # contract on d_head (A @ B^T)
    for h in range(n_head):
        q = qkv[:, h * d_head:(h + 1) * d_head]                    # (q, d)
        rr_q = ((q + rrb_ref[h]) * scale).astype(jnp.bfloat16)
        rk_h = rk[:, h * d_head:(h + 1) * d_head].astype(jnp.bfloat16)
        bd_ref[0, h] = jax.lax.dot_general(
            rr_q, rk_h, dn, preferred_element_type=jnp.float32)    # (q, r)


# ----------------------------------------------------------------------------
# Fused attention: AC scores + (precomputed, shifted) BD + mask + softmax + P@V
# One program per batch; output written lane-dense as (qlen, n_head*d_head).
# ----------------------------------------------------------------------------
def _attn_fused_kernel(n_head, d_head, scale,
                       qkv_ref, rwb_ref, bds_ref, mask_ref, o_ref):
    nd = n_head * d_head
    mask = mask_ref[...] != 0                # (q, k) bool, loaded once
    qkv = qkv_ref[0]                         # (qlen, 3*n*d)
    dn = (((1,), (1,)), ((), ()))            # contract on d_head (A @ B^T)
    for h in range(n_head):
        q = qkv[:, h * d_head:(h + 1) * d_head]                    # (q, d)
        k = qkv[:, nd + h * d_head: nd + (h + 1) * d_head]         # (k, d)
        v = qkv[:, 2 * nd + h * d_head: 2 * nd + (h + 1) * d_head]

        rw_q = ((q + rwb_ref[h]) * scale).astype(jnp.bfloat16)
        ac = jax.lax.dot_general(rw_q, k.astype(jnp.bfloat16), dn,
                                 preferred_element_type=jnp.float32)  # (q, k)

        score = ac + bds_ref[0, h]           # BD already scaled + rel-shifted
        score = jnp.where(mask, -1e30, score)

        m = jnp.max(score, axis=-1, keepdims=True)
        e = jnp.exp(score - m)
        s = jnp.sum(e, axis=-1, keepdims=True)
        p = (e * pl.reciprocal(s, approx=True)).astype(jnp.bfloat16)

        o_ref[0, :, h * d_head:(h + 1) * d_head] = jnp.dot(
            p, v.astype(jnp.bfloat16), preferred_element_type=jnp.float32)


# ----------------------------------------------------------------------------
# Fused output projection + residual add + LayerNorm (row-tiled)
# ----------------------------------------------------------------------------
def _oproj_ln_kernel(eps, av_ref, wo_ref, x_ref, g_ref, b_ref, o_ref):
    proj = jnp.dot(av_ref[...], wo_ref[...], preferred_element_type=jnp.float32)
    z = x_ref[...] + proj
    mu = jnp.mean(z, axis=-1, keepdims=True)
    var = jnp.mean((z - mu) ** 2, axis=-1, keepdims=True)
    o_ref[...] = (z - mu) * jax.lax.rsqrt(var + eps) * g_ref[...] + b_ref[...]


# ----------------------------------------------------------------------------
# Parameter init (deterministic, matches nn.Module shapes; bias-free linears)
# ----------------------------------------------------------------------------
def init_params(key, n_head, d_model, d_head):
    k1, k2, k3, k4, k5 = jax.random.split(key, 5)
    s = 0.1
    return dict(
        n_head=n_head, d_model=d_model, d_head=d_head,
        # stored already transposed: x @ W gives torch's F.linear(x, W^T)
        w_qkv=s * jax.random.normal(k1, (d_model, 3 * n_head * d_head), jnp.float32),
        w_r=s * jax.random.normal(k2, (d_model, n_head * d_head), jnp.float32),
        w_o=s * jax.random.normal(k3, (n_head * d_head, d_model), jnp.float32),
        ln_gamma=1.0 + 0.1 * jax.random.normal(k4, (d_model,), jnp.float32),
        ln_beta=0.1 * jax.random.normal(k5, (d_model,), jnp.float32),
    )


# ----------------------------------------------------------------------------
# Exact torch _rel_shift (pad/reshape trick) per (batch, head) — pure reindex.
# Kept at the JAX level: the irregular (q, r+1)->(r+1, q) reshape has no clean
# in-kernel Mosaic lowering.
# ----------------------------------------------------------------------------
def _rel_shift_bnqr(x):
    b, n, q, r = x.shape
    zp = jnp.zeros((b, n, q, 1), x.dtype)
    xp = jnp.concatenate([zp, x], axis=-1).reshape(b, n, r + 1, q)
    return xp[:, :, 1:, :].reshape(b, n, q, r)


# ----------------------------------------------------------------------------
# Forward (mems=None, pre_lnorm=False, dropout in eval mode)
# ----------------------------------------------------------------------------
def rel_partial_mha_forward(params, w, r, r_w_bias, r_r_bias, attn_mask=None):
    n_head = params["n_head"]
    d_head = params["d_head"]
    d_model = params["d_model"]
    qlen, bsz, _ = w.shape
    rlen = r.shape[0]
    klen = qlen                      # no mems
    nd = n_head * d_head
    scale = 1.0 / (d_head ** 0.5)

    # single layout change up front: (q, b, dm) -> (b, q, dm); every later
    # kernel consumes the projection outputs with zero extra transposes.
    w_bq = jnp.transpose(w, (1, 0, 2))
    w2 = w_bq.reshape(bsz * qlen, d_model)

    # --- projections (tiled Pallas matmuls) ---
    w_heads = pallas_matmul(w2, params["w_qkv"])          # (b*q, 3*n*d)
    qkv = w_heads.reshape(bsz, qlen, 3 * nd)              # [q | k | v] on lanes
    r_head_k = pallas_matmul(r, params["w_r"])            # (rlen, n*d)

    rwb = r_w_bias.reshape(n_head, 1, d_head)
    rrb = r_r_bias.reshape(n_head, 1, d_head)

    # --- BD (pre-scaled) kernel, then exact relative shift as a JAX reindex ---
    bd = pl.pallas_call(
        functools.partial(_bd_kernel, n_head, d_head, scale),
        grid=(bsz,),
        out_shape=jax.ShapeDtypeStruct((bsz, n_head, qlen, rlen), jnp.float32),
        in_specs=[
            pl.BlockSpec((1, qlen, 3 * nd), lambda b: (b, 0, 0)),
            pl.BlockSpec((rlen, nd), lambda b: (0, 0)),
            pl.BlockSpec((n_head, 1, d_head), lambda b: (0, 0, 0)),
        ],
        out_specs=pl.BlockSpec((1, n_head, qlen, rlen), lambda b: (b, 0, 0, 0)),
        compiler_params=pltpu.CompilerParams(
            dimension_semantics=("parallel",)),
    )(qkv, r_head_k, rrb)
    bd_shift = _rel_shift_bnqr(bd)                        # (b, n, q, r), scaled

    # --- mask prep (int, finite sentinel applied in-kernel) ---
    if attn_mask is None:
        mask_i = jnp.zeros((qlen, klen), jnp.int32)
    else:
        mask_i = attn_mask.astype(jnp.int32)

    # --- fused attention: AC + BD_shift + mask + softmax + P@V ---
    attn_vec = pl.pallas_call(
        functools.partial(_attn_fused_kernel, n_head, d_head, scale),
        grid=(bsz,),
        out_shape=jax.ShapeDtypeStruct((bsz, qlen, nd), jnp.float32),
        in_specs=[
            pl.BlockSpec((1, qlen, 3 * nd), lambda b: (b, 0, 0)),
            pl.BlockSpec((n_head, 1, d_head), lambda b: (0, 0, 0)),
            pl.BlockSpec((1, n_head, qlen, klen), lambda b: (b, 0, 0, 0)),
            pl.BlockSpec((qlen, klen), lambda b: (0, 0)),
        ],
        out_specs=pl.BlockSpec((1, qlen, nd), lambda b: (b, 0, 0)),
        compiler_params=pltpu.CompilerParams(
            dimension_semantics=("parallel",)),
    )(qkv, rwb, bd_shift, mask_i)

    # --- fused output projection + residual + layer norm (row-tiled) ---
    rows = bsz * qlen
    tr = _pick_tile(rows, 256)
    av2 = attn_vec.reshape(rows, nd)
    out = pl.pallas_call(
        functools.partial(_oproj_ln_kernel, 1e-5),
        grid=(rows // tr,),
        out_shape=jax.ShapeDtypeStruct((rows, d_model), jnp.float32),
        in_specs=[
            pl.BlockSpec((tr, nd), lambda i: (i, 0)),
            pl.BlockSpec((nd, d_model), lambda i: (0, 0)),
            pl.BlockSpec((tr, d_model), lambda i: (i, 0)),
            pl.BlockSpec((1, d_model), lambda i: (0, 0)),
            pl.BlockSpec((1, d_model), lambda i: (0, 0)),
        ],
        out_specs=pl.BlockSpec((tr, d_model), lambda i: (i, 0)),
        compiler_params=pltpu.CompilerParams(
            dimension_semantics=("parallel",)),
    )(av2, params["w_o"], w2,
      params["ln_gamma"].reshape(1, d_model),
      params["ln_beta"].reshape(1, d_model))

    return jnp.transpose(out.reshape(bsz, qlen, d_model), (1, 0, 2))


# ----------------------------------------------------------------------------
# Pure-JAX reference (mirrors the torch forward) for verification
# ----------------------------------------------------------------------------
def reference_forward(params, w, r, r_w_bias, r_r_bias, attn_mask=None):
    n_head = params["n_head"]
    d_head = params["d_head"]
    qlen, bsz, d_model = w.shape
    rlen = r.shape[0]
    nhd = n_head * d_head
    scale = 1.0 / (d_head ** 0.5)

    w_heads = w @ params["w_qkv"]
    r_head_k = (r @ params["w_r"]).reshape(rlen, n_head, d_head)
    w_head_q = w_heads[..., :nhd].reshape(qlen, bsz, n_head, d_head)
    w_head_k = w_heads[..., nhd:2 * nhd].reshape(qlen, bsz, n_head, d_head)
    w_head_v = w_heads[..., 2 * nhd:].reshape(qlen, bsz, n_head, d_head)

    AC = jnp.einsum('ibnd,jbnd->ijbn', w_head_q + r_w_bias, w_head_k)
    BD = jnp.einsum('ibnd,jnd->ijbn', w_head_q + r_r_bias, r_head_k)
    zp = jnp.zeros((qlen, 1, bsz, n_head), BD.dtype)
    BDp = jnp.concatenate([zp, BD], axis=1).reshape(rlen + 1, qlen, bsz, n_head)
    BD = BDp[1:].reshape(qlen, rlen, bsz, n_head)

    score = (AC + BD) * scale
    if attn_mask is not None:
        score = jnp.where(attn_mask[:, :, None, None], -jnp.inf, score)
    prob = jax.nn.softmax(score, axis=1)
    attn_vec = jnp.einsum('ijbn,jbnd->ibnd', prob, w_head_v).reshape(qlen, bsz, nhd)
    attn_out = attn_vec @ params["w_o"]

    y = w + attn_out
    mu = jnp.mean(y, axis=-1, keepdims=True)
    var = jnp.mean((y - mu) ** 2, axis=-1, keepdims=True)
    return (y - mu) / jnp.sqrt(var + 1e-5) * params["ln_gamma"] + params["ln_beta"]


# ----------------------------------------------------------------------------
if __name__ == "__main__":
    n_head, d_model, d_head = 4, 32, 8
    qlen, bsz = 8, 2
    rlen = qlen  # no mems -> klen == qlen == rlen

    key = jax.random.PRNGKey(0)
    k_par, k_w, k_r, k_rw, k_rr = jax.random.split(key, 5)
    params = init_params(k_par, n_head, d_model, d_head)

    w = jax.random.normal(k_w, (qlen, bsz, d_model), jnp.float32)
    r = jax.random.normal(k_r, (rlen, d_model), jnp.float32)
    r_w_bias = 0.1 * jax.random.normal(k_rw, (n_head, d_head), jnp.float32)
    r_r_bias = 0.1 * jax.random.normal(k_rr, (n_head, d_head), jnp.float32)
    attn_mask = jnp.triu(jnp.ones((qlen, qlen), dtype=bool), k=1)  # causal

    out = rel_partial_mha_forward(params, w, r, r_w_bias, r_r_bias, attn_mask)
    out = jax.block_until_ready(out)

    ref = reference_forward(params, w, r, r_w_bias, r_r_bias, attn_mask)
    # bf16 MXU inputs (f32 accumulation) -> slightly looser tolerance than pure f32
    np.testing.assert_allclose(np.asarray(out), np.asarray(ref),
                               rtol=3e-2, atol=3e-2)
    assert out.shape == (qlen, bsz, d_model)
    assert bool(jnp.all(jnp.isfinite(out)))
    print("KERNEL_OK")
</pallas_src>

<mosaic_0001>
module attributes {stable_mosaic.version = 11 : i64} {
  func.func @_matmul_tiled_kernel(%arg0: i32, %arg1: i32, %arg2: i32, %arg3: memref<16x32xf32, #tpu.memory_space<vmem>>, %arg4: memref<32x96xf32, #tpu.memory_space<vmem>>, %arg5: memref<16x96xf32, #tpu.memory_space<vmem>>, %arg6: memref<16x96xf32, #tpu.memory_space<vmem>>) attributes {dimension_semantics = [#tpu.dimension_semantics<parallel>, #tpu.dimension_semantics<parallel>, #tpu.dimension_semantics<arbitrary>], iteration_bounds = array<i64: 1, 1, 1>, scalar_prefetch = 0 : i64, scratch_operands = 1 : i64, tpu.core_type = #tpu.core_type<tc>, window_params = [{transform_indices = @transform_0, window_bounds = array<i64: 16, 32>}, {transform_indices = @transform_1, window_bounds = array<i64: 32, 96>}, {transform_indices = @transform_2, window_bounds = array<i64: 16, 96>}]} {
    %c0_i32 = arith.constant 0 : i32
    %0 = arith.cmpi eq, %arg2, %c0_i32 : i32
    %1 = arith.extui %0 : i1 to i32
    %c0_i32_0 = arith.constant 0 : i32
    %2 = arith.cmpi ne, %1, %c0_i32_0 : i32
    scf.if %2 {
      %cst_10 = arith.constant 0.000000e+00 : f32
      %12 = vector.broadcast %cst_10 : f32 to vector<16x96xf32>
      %c0_11 = arith.constant 0 : index
      %c0_12 = arith.constant 0 : index
      %13 = vector.load %arg6[%c0_11, %c0_12] : memref<16x96xf32, #tpu.memory_space<vmem>>, vector<16x96xf32>
      tpu.vector_store %arg6[%c0_11, %c0_12], %12 {strides = array<i32>} : memref<16x96xf32, #tpu.memory_space<vmem>>, vector<16x96xf32>,
    } else {
    }
    %c0 = arith.constant 0 : index
    %c0_1 = arith.constant 0 : index
    %3 = vector.load %arg6[%c0, %c0_1] : memref<16x96xf32, #tpu.memory_space<vmem>>, vector<16x96xf32>
    %c0_2 = arith.constant 0 : index
    %c0_3 = arith.constant 0 : index
    %4 = vector.load %arg3[%c0_2, %c0_3] : memref<16x32xf32, #tpu.memory_space<vmem>>, vector<16x32xf32>
    %c0_4 = arith.constant 0 : index
    %c0_5 = arith.constant 0 : index
    %5 = vector.load %arg4[%c0_4, %c0_5] : memref<32x96xf32, #tpu.memory_space<vmem>>, vector<32x96xf32>
    %cst = arith.constant dense<0.000000e+00> : vector<16x96xf32>
    %6 = tpu.matmul %4, %5, %cst {dimension_numbers = #tpu.dot_dimension_numbers<[1], [0], [0], [1], [0, 0, 1, 1], [], []>} : vector<16x32xf32>, vector<32x96xf32>, vector<16x96xf32> -> vector<16x96xf32>
    %7 = arith.addf %3, %6 : vector<16x96xf32>
    %c0_6 = arith.constant 0 : index
    %c0_7 = arith.constant 0 : index
    %8 = vector.load %arg6[%c0_6, %c0_7] : memref<16x96xf32, #tpu.memory_space<vmem>>, vector<16x96xf32>
    tpu.vector_store %arg6[%c0_6, %c0_7], %7 {strides = array<i32>} : memref<16x96xf32, #tpu.memory_space<vmem>>, vector<16x96xf32>,
    %c0_i32_8 = arith.constant 0 : i32
    %9 = arith.cmpi eq, %arg2, %c0_i32_8 : i32
    %10 = arith.extui %9 : i1 to i32
    %c0_i32_9 = arith.constant 0 : i32
    %11 = arith.cmpi ne, %10, %c0_i32_9 : i32
    scf.if %11 {
      %c0_10 = arith.constant 0 : index
      %c0_11 = arith.constant 0 : index
      %12 = vector.load %arg6[%c0_10, %c0_11] : memref<16x96xf32, #tpu.memory_space<vmem>>, vector<16x96xf32>
      %c0_12 = arith.constant 0 : index
      %c0_13 = arith.constant 0 : index
      %13 = vector.load %arg5[%c0_12, %c0_13] : memref<16x96xf32, #tpu.memory_space<vmem>>, vector<16x96xf32>
      tpu.vector_store %arg5[%c0_12, %c0_13], %12 {strides = array<i32>} : memref<16x96xf32, #tpu.memory_space<vmem>>, vector<16x96xf32>,
    } else {
    }
    return
  }
  func.func @transform_0(%arg0: i32, %arg1: i32, %arg2: i32) -> (i32, i32) {
    %c0_i32 = arith.constant 0 : i32
    return %arg0, %arg2 : i32, i32
  }
  func.func @transform_1(%arg0: i32, %arg1: i32, %arg2: i32) -> (i32, i32) {
    %c0_i32 = arith.constant 0 : i32
    return %arg2, %arg1 : i32, i32
  }
  func.func @transform_2(%arg0: i32, %arg1: i32, %arg2: i32) -> (i32, i32) {
    %c0_i32 = arith.constant 0 : i32
    return %arg0, %arg1 : i32, i32
  }
}

</mosaic_0001>

<bundles_post_ra>
// kernel: tpu_custom_call.1
= control target key start
LH: loop header
LB: loop body
LE: loop exit
PB: predicated region body
PF: predicated region fallthrough
CT: control target
= control target key end

     0   :  { %7 = vsyncpa [#allocation4], 0  ;;  %s256_s0 = inlined_call_operand.hbm [shape: f32[16,32], index: 0, kind: input, shape index: {}]   ;;  %s257_s1 = inlined_call_operand.hbm [shape: f32[32,96], index: 1, kind: input, shape index: {}]   ;;  %s258_s2 = inlined_call_operand.hbm [shape: f32[16,96], index: 2, kind: output, shape index: {}]  }
   0x1   :  { %8 = vsyncpa [#allocation7], 0 }
   0x2   :  { %9 = vsyncpa [#allocation5], 0  ;;  %s14_s11 = sshll.u32 %s256_s0, 4  ;;  %s211_s12 = smov [#allocation3]   ;;  %s15_s11 = int_to_ptr.hbm [resolvable:$true] %s14_s11 }
   0x3   :  { %s16_s13 = sshll.u32 %s211_s12, 4  ;;  %s27_s16 = sshll.u32 %s257_s1, 4  ;;  %s17_s13 = int_to_ptr.vmem [resolvable:$true] %s16_s13  ;;  %s28_s16 = int_to_ptr.hbm [resolvable:$true] %s27_s16 }
   0x4   :  { %s212_s17 = smov 128   ;;  %s213_s18 = smov 8  }
   0x5   :  { %22 = dma.hbm_to_vmem [thread:$0]  %s15_s11, 256, %s17_s13, [#allocation4], %s212_s17, %s212_s17, %s213_s18  }
   0x6   :  { %s214_s19 = smov [#allocation6]  }
   0x7   :  { %s29_s20 = sshll.u32 %s214_s19, 4  ;;  %s30_s20 = int_to_ptr.vmem [resolvable:$true] %s29_s20 }
   0x8   :  { %35 = dma.hbm_to_vmem [thread:$0]  %s28_s16, 512, %s30_s20, [#allocation7], %s212_s17, %s212_s17, %s213_s18  }
   0x9   :  { %205 = dma.done.wait [#allocation4], 256  }
   0xa   :  { %206 = vsyncadd [#allocation4], 4294967040 }
   0xb   :  { %207 = dma.done.wait [#allocation7], 512  }
   0xc   :  { %208 = vsyncadd [#allocation7], 4294966784  ;;  %vm48_vm0 = vcmask 785408   ;;  %v215_v0 = vmov 0.0   ;;  %v58_v1 = vld [vmem:[#allocation6 + $0x18] sm:$0xff]  ;;  %v57_v2 = vld [vmem:[#allocation6 + $0x10] sm:$0xff] }
   0xd   :  { %49 = vst.msk [vmem:[#allocation2] sm:$0xff] %vm48_vm0, %v215_v0  ;;  %78 = vmatpush.msra.mxu0 %v58_v1  ;;  %123 = vmatpush.msra.mxu1 %v58_v1  ;;  %v56_v3 = vld [vmem:[#allocation6 + $0x8] sm:$0xff]  ;;  %v55_v4 = vld [vmem:[#allocation6] sm:$0xff]  ;;  %v53_v5 = vld [vmem:[#allocation3] sm:$0xff]  ;;  %vm59_vm1 = vcmask 261120   ;;  %s216_s0 = smov [#allocation8]  }
   0xe   :  { %50 = vst.msk [vmem:[#allocation2 + $0x8] sm:$0xff] %vm48_vm0, %v215_v0  ;;  %v54_v6 = vld [vmem:[#allocation3 + $0x8] sm:$0xff]  ;;  %s105_s1 = sshll.u32 %s216_s0, 4  ;;  %s107_s23 = sshll.u32 %s258_s2, 4  ;;  %s106_s1 = int_to_ptr.vmem [resolvable:$true] %s105_s1  ;;  %s108_s23 = int_to_ptr.hbm [resolvable:$true] %s107_s23 }
   0xf   :  { %79 = vmatpush.msra.mxu0 %v57_v2  ;;  %124 = vmatpush.msra.mxu1 %v57_v2 }
  0x11   :  { %80 = vmatpush.msra.mxu0 %v56_v3  ;;  %125 = vmatpush.msra.mxu1 %v56_v3 }
  0x13   :  { %81 = vmatpush.msra.mxu0 %v55_v4  ;;  %126 = vmatpush.msra.mxu1 %v55_v4 }
  0x14   :  { %121 = vmatmul.msk.f32.vlgmr.msra.gmra.mxu0 %vm59_vm1, %v53_v5  ;;  %122 = vmatmul.msk.f32.vlgmr.msra.gmra.mxu1 %vm59_vm1, %v54_v6  ;;  %v51_v7 = vld [vmem:[#allocation2] sm:$0xff] }
  0x15   :  { %v52_v8 = vld [vmem:[#allocation2 + $0x8] sm:$0xff] }
  0x91   :  { %v83_v9 = vpop.f32.mrf.mxu0  ;;  %v86_v10 = vpop.f32.mrf.mxu1 }
  0x92   :  { %v89_v11 = vadd.f32 %v83_v9, %v51_v7  ;;  %v90_v12 = vadd.f32 %v86_v10, %v52_v8 }
  0x94   :  { %92 = vst.msk [vmem:[#allocation2] sm:$0xff] %vm48_vm0, %v89_v11 }
  0x95   :  { %93 = vst.msk [vmem:[#allocation2 + $0x8] sm:$0xff] %vm48_vm0, %v90_v12 }
  0x9b   :  { %v97_v13 = vld [vmem:[#allocation2] sm:$0xff] }
  0x9c   :  { %v98_v14 = vld [vmem:[#allocation2 + $0x8] sm:$0xff]  ;;  %99 = vst.msk [vmem:[#allocation8] sm:$0xff] %vm48_vm0, %v97_v13 }
  0x9d   :  { %100 = vst.msk [vmem:[#allocation8 + $0x8] sm:$0xff] %vm48_vm0, %v98_v14 }
  0x9e   :  { %113 = dma.vmem_to_hbm [thread:$0]  %s106_s1, 256, %s108_s23, [#allocation5], %s212_s17, %s212_s17, %s213_s18  }
  0x9f   :  { %209 = dma.done.wait [#allocation5], 256  }
  0xa0   :  { %210 = vsyncadd [#allocation5], 4294967040 }
  0xa1   :  { %118 = vsyncpa [#allocation4], 1 }
  0xa2   :  { %119 = vsyncpa [#allocation7], 1 }
  0xa3   :  { %120 = vsyncpa [#allocation5], 1 }

</bundles_post_ra>
